<compile_context>
chip_gen: v7x
topology: tpu7x:2x2x1
jax: 0.10.0
libtpu: 0.0.40
codegen_flags: <defaults>
</compile_context>

<pallas_src>
import math

import numpy as np

import jax
import jax.numpy as jnp
from jax.experimental import pallas as pl
from jax.experimental.pallas import tpu as pltpu

# GaussianNoiseSchedule(kind="log_snr", log_snr_range=(-7.0, 13.5))
L_MIN = -7.0
L_MAX = 13.5
RFF_SCALE = 0.8

TWO_PI = 2.0 * math.pi
INV_TWO_PI = 1.0 / TWO_PI
HALF_PI = 0.5 * math.pi


# ---------------------------------------------------------------------------
# Kernel
# ---------------------------------------------------------------------------
def _noise_time_embed_kernel(t_ref, a_ref, b_ref, o_ref):
    """t_ref: (tb, g) f32 -- g consecutive samples per packed output row.
    a_ref: (g, P) f32 -- group-masked scale rows, P = g*d_model.
           a[j, l] = 2*pi*B[l%d_model%d_half]*(L_MIN-L_MAX) on group j's lanes, else 0.
    b_ref: (1, P) f32 -- bias row: 2*pi*B*L_MAX, with an extra -pi/2 on sin lanes.
    o_ref: (tb, P) f32 -- lane-dense packed embedding (cos-only store)."""
    t = t_ref[...]                        # (tb, g)
    a = a_ref[...]                        # (g, P)
    b = b_ref[...]                        # (1, P)

    # proj[i, l] = t[i, l // d_model] * scale[l] + bias[l], built from g broadcast
    # FMAs against disjointly-masked constant rows (g is tiny and static).
    proj = b
    for j in range(t.shape[1]):
        proj = proj + t[:, j:j + 1] * a[j:j + 1, :]          # (tb, P)

    # 2*pi range reduction keeps the EUP cos accurate for |proj| ~ 1e2 (exact
    # periods subtracted, ~1e-5 residual error -- far inside tolerance).
    # floor(x+0.5) is used instead of rint: one extra (free) VPU add, but its
    # lowering is guaranteed on every Mosaic version.
    k = jnp.floor(proj * INV_TWO_PI + 0.5)
    r = proj - k * TWO_PI

    # sin lanes carry a -pi/2 phase inside b, so a single cos covers cos and sin.
    o_ref[...] = jnp.cos(r)


# ---------------------------------------------------------------------------
# Construction-time parameter folding
# ---------------------------------------------------------------------------
def build_rff_affine(rff_weight):
    """Fold 2*pi, the affine log-SNR map and the sin phase into two (1, d_model) rows.

    proj = 2*pi*B*((1-t)*L_MAX + t*L_MIN) = t * a + b   with
      a = 2*pi*B*(L_MIN - L_MAX),   b = 2*pi*B*L_MAX   (and b - pi/2 on sin lanes).
    """
    w = jnp.asarray(rff_weight, jnp.float32)                 # (1, d_half)
    w2pi = TWO_PI * w
    a_half = w2pi * (L_MIN - L_MAX)
    b_half = w2pi * L_MAX
    a_row = jnp.concatenate([a_half, a_half], axis=1)        # (1, d_model)
    b_row = jnp.concatenate([b_half, b_half - HALF_PI], axis=1)
    return a_row, b_row


def _pick_block_rows(rows, row_width):
    """Rows per grid step: ~4 MiB f32 output block, multiple of 8; split in two
    when a single block would cover everything but there is enough work, so the
    'parallel' grid axis can shard across v7x's two TensorCores."""
    target = (4 << 20) // (4 * row_width)
    tb = max(8, (target // 8) * 8)
    if tb >= rows:
        if rows >= 16:
            half = (((rows + 1) // 2 + 7) // 8) * 8
            if half < rows:
                return half
        return rows                      # single full-array block (always legal)
    return tb


# ---------------------------------------------------------------------------
# Wrapper
# ---------------------------------------------------------------------------
def noise_time_embedding(t, a_row, b_row):
    """t: (batch,) or (batch, 1) f32 in [0, 1]; a_row/b_row from build_rff_affine.
    Returns (batch, 1, d_model) f32."""
    if t.ndim == 1:
        t = t[:, None]
    t = t.astype(jnp.float32)
    batch = t.shape[0]
    d_model = a_row.shape[1]

    # Lane-dense packing factor: g samples per output row so g*d_model % 128 == 0.
    if d_model % 128 == 0:
        g = 1
    else:
        g = 128 // math.gcd(d_model, 128)
        if batch % g != 0:
            g = 1                        # correct fallback (masked partial stores)
    row_width = g * d_model
    rows = batch // g

    # Row-major views only: no data movement.
    t_packed = t.reshape(rows, g)
    # Tiny constant prep (tiling + group masking); constant-folds under jit.
    a_tiled = jnp.tile(a_row, (1, g))                                     # (1, P)
    mask = jnp.repeat(jnp.eye(g, dtype=jnp.float32), d_model, axis=1)     # (g, P)
    a_packed = mask * a_tiled                                             # (g, P)
    b_packed = jnp.tile(b_row, (1, g))                                    # (1, P)

    tb = _pick_block_rows(rows, row_width)
    grid = (pl.cdiv(rows, tb),)

    out_packed = pl.pallas_call(
        _noise_time_embed_kernel,
        out_shape=jax.ShapeDtypeStruct((rows, row_width), jnp.float32),
        grid=grid,
        in_specs=[
            pl.BlockSpec((tb, g), lambda i: (i, 0)),
            pl.BlockSpec((g, row_width), lambda i: (0, 0)),
            pl.BlockSpec((1, row_width), lambda i: (0, 0)),
        ],
        out_specs=pl.BlockSpec((tb, row_width), lambda i: (i, 0)),
        compiler_params=pltpu.CompilerParams(
            dimension_semantics=("parallel",)),
    )(t_packed, a_packed, b_packed)

    # (rows, g*d_model) row-major is byte-identical to (batch, d_model).
    return out_packed.reshape(batch, d_model)[:, None, :]


# ---------------------------------------------------------------------------
# Float64 reference (unfolded math, straight from the PyTorch module)
# ---------------------------------------------------------------------------
def noise_time_embedding_ref_f64(t, rff_weight):
    t64 = np.asarray(t, dtype=np.float64).reshape(-1, 1)             # (B, 1)
    w64 = np.asarray(rff_weight, dtype=np.float64)                    # (1, D/2)
    log_snr = (1.0 - t64) * L_MAX + t64 * L_MIN                       # (B, 1)
    proj = 2.0 * np.pi * log_snr * w64                                # (B, D/2)
    out = np.concatenate([np.cos(proj), np.sin(proj)], axis=-1)       # (B, D)
    return out[:, None, :]                                            # (B, 1, D)


if __name__ == "__main__":
    batch = 8
    dim_embedding = 32  # must be even

    key = jax.random.PRNGKey(0)
    k_t, k_w = jax.random.split(key)

    # t in (0, 1)
    t = jax.random.uniform(k_t, (batch, 1), dtype=jnp.float32,
                           minval=0.05, maxval=0.95)

    # Non-trainable FourierFeaturization buffer: B = randn(1, d_model//2) * rff_scale
    rff_weight = (jax.random.normal(k_w, (1, dim_embedding // 2),
                                    dtype=jnp.float32) * RFF_SCALE)

    # Construction-time fold (done once, not per call).
    a_row, b_row = build_rff_affine(rff_weight)

    out = noise_time_embedding(t, a_row, b_row)
    out = jax.block_until_ready(out)

    ref = noise_time_embedding_ref_f64(np.asarray(t), np.asarray(rff_weight))

    assert out.shape == (batch, 1, dim_embedding), out.shape
    max_err = float(np.max(np.abs(np.asarray(out, dtype=np.float64) - ref)))
    # f32 angles of magnitude ~1e2 carry ~1e-5 intrinsic rounding before the
    # transcendental; 2e-3 gives a comfortable (documented) margin for values
    # in [-1, 1].  Observed error is ~2e-5.
    assert max_err < 2e-3, f"max abs err {max_err}"

    print("KERNEL_OK")
</pallas_src>

<mosaic_0001>
module attributes {stable_mosaic.version = 11 : i64} {
  func.func @_noise_time_embed_kernel(%arg0: i32, %arg1: memref<2x4xf32, #tpu.memory_space<vmem>>, %arg2: memref<4x128xf32, #tpu.memory_space<vmem>>, %arg3: memref<1x128xf32, #tpu.memory_space<vmem>>, %arg4: memref<2x128xf32, #tpu.memory_space<vmem>>) attributes {dimension_semantics = [#tpu.dimension_semantics<parallel>], iteration_bounds = array<i64: 1>, scalar_prefetch = 0 : i64, scratch_operands = 0 : i64, tpu.core_type = #tpu.core_type<tc>, window_params = [{transform_indices = @transform_0, window_bounds = array<i64: 2, 4>}, {pipeline_mode = #tpu.pipeline_mode<synchronous>, transform_indices = @transform_1, window_bounds = array<i64: 4, 128>}, {pipeline_mode = #tpu.pipeline_mode<synchronous>, transform_indices = @transform_2, window_bounds = array<i64: 1, 128>}, {transform_indices = @transform_3, window_bounds = array<i64: 2, 128>}]} {
    %c0 = arith.constant 0 : index
    %c0_0 = arith.constant 0 : index
    %0 = vector.load %arg1[%c0, %c0_0] : memref<2x4xf32, #tpu.memory_space<vmem>>, vector<2x4xf32>
    %c0_1 = arith.constant 0 : index
    %c0_2 = arith.constant 0 : index
    %1 = vector.load %arg2[%c0_1, %c0_2] : memref<4x128xf32, #tpu.memory_space<vmem>>, vector<4x128xf32>
    %c0_3 = arith.constant 0 : index
    %c0_4 = arith.constant 0 : index
    %2 = vector.load %arg3[%c0_3, %c0_4] : memref<1x128xf32, #tpu.memory_space<vmem>>, vector<1x128xf32>
    %3 = vector.extract_strided_slice %0 {offsets = [0, 0], sizes = [2, 1], strides = [1, 1]} : vector<2x4xf32> to vector<2x1xf32>
    %4 = vector.extract_strided_slice %1 {offsets = [0, 0], sizes = [1, 128], strides = [1, 1]} : vector<4x128xf32> to vector<1x128xf32>
    %5 = vector.broadcast %3 : vector<2x1xf32> to vector<2x128xf32>
    %6 = vector.broadcast %4 : vector<1x128xf32> to vector<2x128xf32>
    %7 = arith.mulf %5, %6 : vector<2x128xf32>
    %8 = vector.broadcast %2 : vector<1x128xf32> to vector<2x128xf32>
    %9 = arith.addf %8, %7 : vector<2x128xf32>
    %10 = vector.extract_strided_slice %0 {offsets = [0, 1], sizes = [2, 1], strides = [1, 1]} : vector<2x4xf32> to vector<2x1xf32>
    %11 = vector.extract_strided_slice %1 {offsets = [1, 0], sizes = [1, 128], strides = [1, 1]} : vector<4x128xf32> to vector<1x128xf32>
    %12 = vector.broadcast %10 : vector<2x1xf32> to vector<2x128xf32>
    %13 = vector.broadcast %11 : vector<1x128xf32> to vector<2x128xf32>
    %14 = arith.mulf %12, %13 : vector<2x128xf32>
    %15 = arith.addf %9, %14 : vector<2x128xf32>
    %16 = vector.extract_strided_slice %0 {offsets = [0, 2], sizes = [2, 1], strides = [1, 1]} : vector<2x4xf32> to vector<2x1xf32>
    %17 = vector.extract_strided_slice %1 {offsets = [2, 0], sizes = [1, 128], strides = [1, 1]} : vector<4x128xf32> to vector<1x128xf32>
    %18 = vector.broadcast %16 : vector<2x1xf32> to vector<2x128xf32>
    %19 = vector.broadcast %17 : vector<1x128xf32> to vector<2x128xf32>
    %20 = arith.mulf %18, %19 : vector<2x128xf32>
    %21 = arith.addf %15, %20 : vector<2x128xf32>
    %22 = vector.extract_strided_slice %0 {offsets = [0, 3], sizes = [2, 1], strides = [1, 1]} : vector<2x4xf32> to vector<2x1xf32>
    %23 = vector.extract_strided_slice %1 {offsets = [3, 0], sizes = [1, 128], strides = [1, 1]} : vector<4x128xf32> to vector<1x128xf32>
    %24 = vector.broadcast %22 : vector<2x1xf32> to vector<2x128xf32>
    %25 = vector.broadcast %23 : vector<1x128xf32> to vector<2x128xf32>
    %26 = arith.mulf %24, %25 : vector<2x128xf32>
    %27 = arith.addf %21, %26 : vector<2x128xf32>
    %cst = arith.constant 0.159154937 : f32
    %28 = vector.broadcast %cst : f32 to vector<2x128xf32>
    %29 = arith.mulf %27, %28 : vector<2x128xf32>
    %cst_5 = arith.constant 5.000000e-01 : f32
    %30 = vector.broadcast %cst_5 : f32 to vector<2x128xf32>
    %31 = arith.addf %29, %30 : vector<2x128xf32>
    %32 = math.floor %31 : vector<2x128xf32>
    %cst_6 = arith.constant 6.28318548 : f32
    %33 = vector.broadcast %cst_6 : f32 to vector<2x128xf32>
    %34 = arith.mulf %32, %33 : vector<2x128xf32>
    %35 = arith.subf %27, %34 : vector<2x128xf32>
    %36 = math.cos %35 : vector<2x128xf32>
    %c0_7 = arith.constant 0 : index
    %c0_8 = arith.constant 0 : index
    %37 = vector.load %arg4[%c0_7, %c0_8] : memref<2x128xf32, #tpu.memory_space<vmem>>, vector<2x128xf32>
    tpu.vector_store %arg4[%c0_7, %c0_8], %36 {strides = array<i32>} : memref<2x128xf32, #tpu.memory_space<vmem>>, vector<2x128xf32>,
    return
  }
  func.func @transform_0(%arg0: i32) -> (i32, i32) {
    %c0_i32 = arith.constant 0 : i32
    %c0_i32_0 = arith.constant 0 : i32
    return %arg0, %c0_i32 : i32, i32
  }
  func.func @transform_1(%arg0: i32) -> (i32, i32) {
    %c0_i32 = arith.constant 0 : i32
    %c0_i32_0 = arith.constant 0 : i32
    %c0_i32_1 = arith.constant 0 : i32
    return %c0_i32, %c0_i32_0 : i32, i32
  }
  func.func @transform_2(%arg0: i32) -> (i32, i32) {
    %c0_i32 = arith.constant 0 : i32
    %c0_i32_0 = arith.constant 0 : i32
    %c0_i32_1 = arith.constant 0 : i32
    return %c0_i32, %c0_i32_0 : i32, i32
  }
  func.func @transform_3(%arg0: i32) -> (i32, i32) {
    %c0_i32 = arith.constant 0 : i32
    %c0_i32_0 = arith.constant 0 : i32
    return %arg0, %c0_i32 : i32, i32
  }
}

</mosaic_0001>

<bundles_post_ra>
// kernel: tpu_custom_call.1
= control target key start
LH: loop header
LB: loop body
LE: loop exit
PB: predicated region body
PF: predicated region fallthrough
CT: control target
= control target key end

     0   :  { %8 = vsyncpa [#allocation3], 0  ;;  %s410_s0 = inlined_call_operand.hbm [shape: f32[2,4], index: 0, kind: input, shape index: {}]   ;;  %s411_s1 = inlined_call_operand.hbm [shape: f32[4,128], index: 1, kind: input, shape index: {}]   ;;  %s412_s2 = inlined_call_operand.vmem [shape: f32[1,128], index: 2, kind: input, shape index: {}]   ;;  %s413_s3 = inlined_call_operand.hbm [shape: f32[2,128], index: 3, kind: output, shape index: {}]  }
   0x1   :  { %9 = vsyncpa [#allocation6], 0 }
   0x2   :  { %10 = vsyncpa [#allocation4], 0  ;;  %s317_s12 = smov [#allocation2]   ;;  %s318_s14 = smov [#allocation5]  }
   0x3   :  { %s17_s13 = sshll.u32 %s317_s12, 4  ;;  %s27_s15 = sshll.u32 %s318_s14, 4  ;;  %s18_s13 = int_to_ptr.vmem [resolvable:$true] %s17_s13  ;;  %s28_s15 = int_to_ptr.vmem [resolvable:$true] %s27_s15 }
   0x4   :  { %s245_s18 = scalar_lea.hbm %s410_s0, 32 }
   0x5   :  { %p246_p0 = scmp.ne.s32.totalorder %s410_s0, %s245_s18  ;;  %p249_p1 = scmp.lt.u32.totalorder %s245_s18, %s410_s0 }
   0x7   :  { %p251_p2 = pnand %p249_p1, %p246_p0 }
   0x9   :  { %254 = shalt.err (!%p251_p2)
}
   0xa   :  { %s255_s23 = scalar_lea.vmem %s18_s13, 32  ;;  %p260_p4 = scmp.lt.s32.totalorder %s18_s13, %s18_s13 }
   0xb   :  { %p256_p3 = scmp.ne.s32.totalorder %s18_s13, %s255_s23  ;;  %p261_p5 = scmp.lt.s32.totalorder %s255_s23, %s255_s23 }
   0xd   :  { %p262_p6 = por %p261_p5, %p260_p4 }
   0xf   :  { %p263_p7 = pnand %p262_p6, %p256_p3 }
  0x11   :  { %266 = shalt.err (!%p263_p7)
}
  0x12   :  { %20 = dma.hbm_to_vmem [thread:$0]  %s410_s0, 32, %s18_s13, [#allocation3]  }
  0x13   :  { %s267_s28 = scalar_lea.hbm %s411_s1, 64 }
  0x14   :  { %p268_p8 = scmp.ne.s32.totalorder %s411_s1, %s267_s28  ;;  %p271_p9 = scmp.lt.u32.totalorder %s267_s28, %s411_s1 }
  0x16   :  { %p273_p10 = pnand %p271_p9, %p268_p8 }
  0x18   :  { %276 = shalt.err (!%p273_p10)
}
  0x19   :  { %s277_s6 = scalar_lea.vmem %s28_s15, 64  ;;  %p282_p12 = scmp.lt.s32.totalorder %s28_s15, %s28_s15 }
  0x1a   :  { %p278_p11 = scmp.ne.s32.totalorder %s28_s15, %s277_s6  ;;  %p283_p13 = scmp.lt.s32.totalorder %s277_s6, %s277_s6 }
  0x1c   :  { %p284_p0 = por %p283_p13, %p282_p12 }
  0x1e   :  { %p285_p1 = pnand %p284_p0, %p278_p11 }
  0x20   :  { %288 = shalt.err (!%p285_p1)
}
  0x21   :  { %30 = dma.hbm_to_vmem [thread:$0]  %s411_s1, 64, %s28_s15, [#allocation6]  }
  0x22   :  { %311 = dma.done.wait [#allocation3], 32  }
  0x23   :  { %312 = vsyncadd [#allocation3], 4294967264 }
  0x24   :  { %313 = dma.done.wait [#allocation6], 64  }
  0x25   :  { %314 = vsyncadd [#allocation6], 4294967232  ;;  %v319_v0 = vmov 0   ;;  %v320_v1 = vmov 2   ;;  %v39_v2 = vld [vmem:[#allocation2] sm:$0x3]  ;;  %v47_v5 = vlaneseq }
  0x26   :  { %236 = vset.pattern.permute.xlu0 %v319_v0  ;;  %238 = vset.pattern.permute.xlu1 %v320_v1  ;;  %v321_v3 = vmov 1   ;;  %v322_v4 = vmov 3   ;;  %v40_v8 = vld [vmem:[#allocation5] sm:$0xf]  ;;  %v214_v17 = vld [vmem:[%s412_s2] ss:$0 sm:$0xff] }
  0x27   :  { %44 = vperm.xlu0 %236, %v39_v2   ;;  %70 = vperm.xlu1 %238, %v39_v2   ;;  %v48_v6 = vshrl.u32 %v47_v5, 7  ;;  %v323_v44 = vmov 683565275   ;;  %v324_v46 = vmov 2475754826   ;;  %s329_s2 = smov [#allocation7]  }
  0x28   :  { %v325_v49 = vmov 2131351028   ;;  %v326_v52 = vmov 2102212464   ;;  %v327_v55 = vmov 920167782  }
  0x29   :  { %v49_v7 = vsub.s32 0, %v48_v6  ;;  %v65_v10 = vsub.s32 1, %v48_v6  ;;  %v75_v12 = vsub.s32 2, %v48_v6  ;;  %v85_v14 = vsub.s32 3, %v48_v6  ;;  %s204_s9 = sshll.u32 %s329_s2, 4  ;;  %s205_s9 = int_to_ptr.vmem [resolvable:$true] %s204_s9 }
  0x2a   :  { %v328_v58 = vmov 1326507024   ;;  %s289_s10 = scalar_lea.vmem %s205_s9, 32  ;;  %p294_p3 = scmp.lt.s32.totalorder %s205_s9, %s205_s9 }
  0x2b   :  { %237 = vset.pattern.permute.xlu0 %v321_v3  ;;  %239 = vset.pattern.permute.xlu1 %v322_v4  ;;  %v50_v9 = vrot.slane %v40_v8, %v49_v7  ;;  %v66_v16 = vrot.slane %v40_v8, %v65_v10  ;;  %v76_v18 = vrot.slane %v40_v8, %v75_v12  ;;  %p290_p2 = scmp.ne.s32.totalorder %s205_s9, %s289_s10  ;;  %p295_p4 = scmp.lt.s32.totalorder %s289_s10, %s289_s10 }
  0x2c   :  { %60 = vperm.xlu0 %237, %v39_v2   ;;  %80 = vperm.xlu1 %239, %v39_v2   ;;  %v86_v19 = vrot.slane %v40_v8, %v85_v14 }
  0x2d   :  { %p296_p5 = por %p295_p4, %p294_p3 }
  0x2f   :  { %p297_p6 = pnand %p296_p5, %p290_p2 }
  0x30   :  { %240 = vset.pattern.permute.xlu0 %v322_v4 }
  0xa6   :  { %v45_v11 = vpop.permute.xlu0 %44  ;;  %v71_v13 = vpop.permute.xlu1 %70 }
  0xa7   :  { %v51_v15 = vmul.f32 %v50_v9, %v45_v11  ;;  %v77_v24 = vmul.f32 %v76_v18, %v71_v13 }
  0xa9   :  { %v58_v22 = vadd.f32 %v214_v17, %v51_v15 }
  0xab   :  { %v61_v20 = vpop.permute.xlu0 %60  ;;  %v81_v21 = vpop.permute.xlu1 %80 }
  0xac   :  { %v67_v23 = vmul.f32 %v66_v16, %v61_v20  ;;  %v87_v26 = vmul.f32 %v86_v19, %v81_v21 }
  0xae   :  { %v68_v25 = vadd.f32 %v67_v23, %v58_v22 }
  0xb0   :  { %v78_v27 = vadd.f32 %v77_v24, %v68_v25 }
  0xb2   :  { %v88_v28 = vadd.f32 %v87_v26, %v78_v27 }
  0xb4   :  { %v89_v29 = vmul.f32 0.15915494, %v88_v28 }
  0xb6   :  { %v90_v30 = vadd.f32 0.5, %v89_v29 }
  0xb8   :  { %v91_v31 = vfloor.f32 %v90_v30 }
  0xba   :  { %v92_v32 = vmul.f32 6.2831855, %v91_v31 }
  0xbc   :  { %v377_v33 = vsub.f32 %v88_v28, %v92_v32 }
  0xbe   :  { %v97_v34 = vand.u32 2139095040, %v377_v33  ;;  %v94_v38 = vand.u32 2147483647, %v377_v33  ;;  %vm96_vm7 = vcmp.lt.s32.totalorder %v377_v33, 0  ;;  %vm186_vm12 = vweird.f32 %v377_v33 }
  0xc0   :  { %v98_v35 = vshrl.u32 %v97_v34, 23  ;;  %v101_v42 = vand.u32 8388607, %v94_v38  ;;  %vm95_vm8 = vcmp.le.f32.partialorder %v94_v38, 0.7853982 }
  0xc2   :  { %v215_v36 = vadd.s32 4294967169, %v98_v35  ;;  %v102_v60 = vor.u32 8388608, %v101_v42 }
  0xc4   :  { %v104_v37 = vadd.s32 1, %v215_v36  ;;  %v142_v10 = vshll.u32 %v102_v60, 8 }
  0xc6   :  { %vm105_vm0 = vcmp.gt.s32.totalorder %v104_v37, 0 }
  0xc7   :  { %v106_v39 = vsel %vm105_vm0, %v104_v37, 0 }
  0xc8   :  { %v108_v40 = vand.u32 31, %v106_v39  ;;  %v107_v43 = vshrl.u32 %v106_v39, 5 }
  0xca   :  { %v109_v41 = vsub.s32 32, %v108_v40  ;;  %v111_v45 = vshll.u32 %v323_v44, %v108_v40  ;;  %v114_v47 = vshll.u32 %v324_v46, %v108_v40  ;;  %v117_v51 = vshll.u32 %v325_v49, %v108_v40 }
  0xcb   :  { %v120_v54 = vshll.u32 %v326_v52, %v108_v40  ;;  %v123_v57 = vshll.u32 %v327_v55, %v108_v40  ;;  %vm126_vm1 = vcmp.lt.s32.totalorder %v107_v43, 1  ;;  %vm129_vm2 = vcmp.lt.s32.totalorder %v107_v43, 4 }
  0xcc   :  { %v112_v48 = vshrl.u32 %v324_v46, %v109_v41  ;;  %v115_v50 = vshrl.u32 %v325_v49, %v109_v41  ;;  %v118_v53 = vshrl.u32 %v326_v52, %v109_v41  ;;  %v121_v56 = vshrl.u32 %v327_v55, %v109_v41 }
  0xcd   :  { %v124_v59 = vshrl.u32 %v328_v58, %v109_v41  ;;  %v110_v5 = vshrl.u32 %v323_v44, %v109_v41  ;;  %vm128_vm3 = vcmp.lt.s32.totalorder %v107_v43, 3  ;;  %vm127_vm4 = vcmp.lt.s32.totalorder %v107_v43, 2 }
  0xce   :  { %v113_v61 = vor.u32 %v112_v48, %v111_v45  ;;  %v116_v62 = vor.u32 %v115_v50, %v114_v47  ;;  %v119_v63 = vor.u32 %v118_v53, %v117_v51  ;;  %v122_v0 = vor.u32 %v121_v56, %v120_v54 }
  0xcf   :  { %v125_v1 = vor.u32 %v124_v59, %v123_v57 }
  0xd0   :  { %v131_v2 = vsel %vm129_vm2, %v119_v63, 2102212464  ;;  %v134_v3 = vsel %vm126_vm1, %v113_v61, %v116_v62  ;;  %v138_v4 = vsel %vm126_vm1, %v116_v62, %v119_v63  ;;  %v135_v6 = vsel %vm129_vm2, %v122_v0, 920167782 }
  0xd1   :  { %v139_v7 = vsel %vm129_vm2, %v125_v1, 1326507024  ;;  %v136_v8 = vsel %vm128_vm3, %v119_v63, %v135_v6  ;;  %v130_v11 = vsel %vm126_vm1, %v110_v5, %v113_v61  ;;  %v132_v12 = vsel %vm128_vm3, %v116_v62, %v131_v2 }
  0xd2   :  { %v140_v9 = vsel %vm128_vm3, %v122_v0, %v139_v7  ;;  %v137_v13 = vsel %vm127_vm4, %v134_v3, %v136_v8  ;;  %v133_v19 = vsel %vm127_vm4, %v130_v11, %v132_v12 }
  0xd3   :  { %v141_v14 = vsel %vm127_vm4, %v138_v4, %v140_v9  ;;  %v386_v17 = vmul.u32.u64.low %v142_v10, %v137_v13  ;;  %v387_v18 = vmul.u32.u64.high %v142_v10, %v137_v13, %v386_v17  ;;  %v149_v21 = vmul.u32 %v142_v10, %v133_v19 }
  0xd4   :  { %v383_v15 = vmul.u32.u64.low %v142_v10, %v141_v14  ;;  %v384_v16 = vmul.u32.u64.high %v142_v10, %v141_v14, %v383_v15 }
  0xd5   :  { %v152_v20 = vadd.s32 1, %v387_v18 }
  0xd6   :  { %vm151_vm5 = vc.u32 %v384_v16, %v386_v17  ;;  %v150_v34 = vadd.s32 %v386_v17, %v384_v16 }
  0xd7   :  { %v153_v22 = vsel %vm151_vm5, %v152_v20, %v387_v18 }
  0xd8   :  { %v154_v23 = vadd.s32 %v153_v22, %v149_v21 }
  0xda   :  { %v155_v24 = vadd.s32 536870912, %v154_v23 }
  0xdc   :  { %v156_v25 = vshrl.u32 %v155_v24, 30 }
  0xde   :  { %v157_v26 = vshll.u32 %v156_v25, 30  ;;  %v180_v49 = vsub.s32 4, %v156_v25 }
  0xe0   :  { %v158_v27 = vsub.s32 %v154_v23, %v157_v26  ;;  %v181_v51 = vsel %vm96_vm7, %v180_v49, %v156_v25 }
  0xe1   :  { %v183_v52 = vsel %vm95_vm8, 0, %v181_v51 }
  0xe2   :  { %v160_v28 = vsub.s32 0, %v158_v27  ;;  %v187_v53 = vand.u32 3, %v183_v52 }
  0xe4   :  { %v216_v29 = vmin.u32 %v160_v28, %v158_v27  ;;  %vm192_vm9 = vcmp.eq.s32.totalorder %v187_v53, 2  ;;  %vm189_vm10 = vcmp.eq.s32.totalorder %v187_v53, 0  ;;  %vm188_vm11 = vcmp.lt.s32.totalorder %v187_v53, 2 }
  0xe6   :  { %v162_v30 = vclz %v216_v29 }
  0xe8   :  { %v217_v31 = vadd.s32 4294967294, %v162_v30 }
  0xea   :  { %vm218_vm6 = vcmp.lt.s32.totalorder %v217_v31, 0 }
  0xeb   :  { %v165_v32 = vsel %vm218_vm6, 0, %v217_v31 }
  0xec   :  { %v166_v35 = vsub.s32 32, %v165_v32  ;;  %v170_v36 = vsub.s32 4294967266, %v165_v32  ;;  %v167_v37 = vshll.u32 %v158_v27, %v165_v32 }
  0xee   :  { %v168_v39 = vshrl.u32 %v150_v34, %v166_v35  ;;  %v171_v40 = vadd.s32 127, %v170_v36 }
  0xf0   :  { %v169_v41 = vor.u32 %v168_v39, %v167_v37  ;;  %v172_v42 = vshll.u32 %v171_v40, 23 }
  0xf2   :  { %v173_v43 = vor.u32 4788187, %v172_v42  ;;  %v176_v45 = vcvt.s32.f32 %v169_v41 }
  0xf4   :  { %v174_v44 = vand.u32 2147483647, %v173_v43 }
  0xf6   :  { %v177_v46 = vmul.f32 %v176_v45, %v174_v44 }
  0xf8   :  { %v178_v47 = vxor.u32 2147483648, %v177_v46 }
  0xfa   :  { %v179_v48 = vsel %vm96_vm7, %v178_v47, %v177_v46 }
  0xfb   :  { %v182_v50 = vsel %vm95_vm8, %v377_v33, %v179_v48 }
  0xfc   :  { %241 = vcosq.f32 %v182_v50 }
  0xfd   :  { %243 = vsinq.f32 %v182_v50 }
 0x106   :  { %v242_v54 = vpop.eup %241 }
 0x107   :  { %v244_v55 = vpop.eup %243  ;;  %v193_v56 = vxor.u32 2147483648, %v242_v54 }
 0x108   :  { %v190_v57 = vxor.u32 2147483648, %v244_v55 }
 0x109   :  { %v194_v58 = vsel %vm192_vm9, %v193_v56, %v244_v55 }
 0x10a   :  { %v191_v38 = vsel %vm189_vm10, %v242_v54, %v190_v57 }
 0x10b   :  { %v195_v59 = vsel %vm188_vm11, %v191_v38, %v194_v58 }
 0x10c   :  { %v196_v60 = vsel %vm186_vm12, nan, %v195_v59 }
 0x10d   :  { %197 = vst [vmem:[#allocation7] sm:$0x3] %v196_v60 }
 0x10e   :  { %300 = shalt.err (!%p297_p6)
}
 0x10f   :  { %s301_s13 = scalar_lea.hbm %s413_s3, 32 }
 0x110   :  { %p302_p7 = scmp.ne.s32.totalorder %s413_s3, %s301_s13  ;;  %p305_p8 = scmp.lt.u32.totalorder %s301_s13, %s413_s3 }
 0x112   :  { %p307_p9 = pnand %p305_p8, %p302_p7 }
 0x114   :  { %310 = shalt.err (!%p307_p9)
}
 0x115   :  { %207 = dma.vmem_to_hbm [thread:$0]  %s205_s9, 32, %s413_s3, [#allocation4]  }
 0x116   :  { %315 = dma.done.wait [#allocation4], 32  }
 0x117   :  { %316 = vsyncadd [#allocation4], 4294967264 }
 0x118   :  { %211 = vsyncpa [#allocation3], 1 }
 0x119   :  { %212 = vsyncpa [#allocation6], 1 }
 0x11a   :  { %213 = vsyncpa [#allocation4], 1 }

</bundles_post_ra>
